<compile_context>
chip_gen: v5e
topology: v5e:2x2
jax: 0.10.0
libtpu: 0.0.40
codegen_flags: <defaults>
</compile_context>

<pallas_src>
import jax
import jax.numpy as jnp
from jax.experimental import pallas as pl
from jax.experimental.pallas import tpu as pltpu

EPS = 1e-6


# ----------------------------- tiling helpers ------------------------------

def _round_up(x, m):
    return ((x + m - 1) // m) * m


def _sublane_multiple(itemsize):
    # f32 -> 8, bf16 -> 16, int8/fp8 -> 32 (packed min tile along sublanes).
    return max(8, 32 // max(int(itemsize), 1))


def _choose_row_tile(n_rows, d, itemsize, target_block_bytes=2 * 1024 * 1024):
    """Rows per block: dtype-aware sublane multiple, sized to ~2 MiB so the
    double-buffered footprint stays comfortably inside the default scoped VMEM
    on every TPU generation (16 MiB on v5e, 32 MiB on v6e/v7x)."""
    sub = _sublane_multiple(itemsize)
    rows = max(sub, target_block_bytes // max(d * int(itemsize), 1))
    rows = max(sub, (rows // sub) * sub)
    # Never allocate a block (much) larger than the data that exists.
    rows = min(rows, _round_up(n_rows, sub))
    return rows


# ----------------------------- Pallas kernels -------------------------------

def _layernorm_kernel(x_ref, a_ref, b_ref, o_ref):
    # x_ref: (TM, D) row tile ; a_ref/b_ref: (1, D), resident across the grid.
    x = x_ref[...].astype(jnp.float32)
    a = a_ref[...].astype(jnp.float32)
    b = b_ref[...].astype(jnp.float32)
    # Single cross-lane (XLU) reduction, reused for the reference's buggy "std".
    mean = jnp.mean(x, axis=-1, keepdims=True)
    inv = pl.reciprocal(mean + EPS, approx=False)   # EUP recip + VPU mul, not a divide
    o_ref[...] = (a * (x - mean) * inv + b).astype(o_ref.dtype)


def _fused_ln_linear_residual_kernel(x_ref, a_ref, b_ref, w_ref, bias_ref, o_ref):
    # One pass: out = x + (norm(x) @ W + bias).  x_ref: (TM, D) row tile,
    # w_ref: (D, N) resident, bias/a/b: (1, *) resident.
    x = x_ref[...].astype(jnp.float32)
    a = a_ref[...].astype(jnp.float32)
    b = b_ref[...].astype(jnp.float32)
    mean = jnp.mean(x, axis=-1, keepdims=True)
    inv = pl.reciprocal(mean + EPS, approx=False)
    normed = a * (x - mean) * inv + b
    y = jnp.dot(normed.astype(w_ref.dtype), w_ref[...],
                preferred_element_type=jnp.float32)
    # Residual + bias added in f32, single store back to HBM (lane-dense N).
    o_ref[...] = (x + y + bias_ref[...].astype(jnp.float32)).astype(o_ref.dtype)
    # TODO(synk): for real model widths (D, N >> 128), tile N/K to multiples of
    # 256 for full MXU utilization on v6e/v7x; D=128 demo keeps W fully resident.


# ----------------------------- wrappers --------------------------------------

def layernorm_pallas(x, a2, b2):
    """Buggy-reference LayerNorm over the last axis, as one Pallas pass."""
    B, S, D = x.shape
    dtype = x.dtype
    R = B * S
    tm = _choose_row_tile(R, D, dtype.itemsize)

    x2 = x.reshape(R, D)               # free reshape, no HBM copy
    out = pl.pallas_call(
        _layernorm_kernel,
        out_shape=jax.ShapeDtypeStruct((R, D), dtype),
        grid=(pl.cdiv(R, tm),),        # ragged last block handled by Pallas
        in_specs=[
            pl.BlockSpec((tm, D), lambda i: (i, 0)),
            pl.BlockSpec((1, D), lambda i: (0, 0)),   # resident in VMEM
            pl.BlockSpec((1, D), lambda i: (0, 0)),   # resident in VMEM
        ],
        out_specs=pl.BlockSpec((tm, D), lambda i: (i, 0)),
        compiler_params=pltpu.CompilerParams(
            dimension_semantics=("parallel",)),
    )(x2, a2.reshape(1, D), b2.reshape(1, D))
    return out.reshape(B, S, D)


def sublayer_connection(x, a2, b2, sublayer):
    """Generic path: x + dropout(sublayer(norm(x))), dropout = identity (eval).

    The residual add is deliberately left to XLA so it fuses into the
    sublayer's epilogue instead of costing an extra HBM pass."""
    return x + sublayer(layernorm_pallas(x, a2, b2))


def sublayer_connection_fused_linear(x, a2, b2, W, bias):
    """Fully fused path for a linear sublayer: one pallas_call computing
    x + (norm(x) @ W + bias).  `normed` and the sublayer output never touch HBM."""
    B, S, D = x.shape
    dtype = x.dtype
    R = B * S
    N = W.shape[1]
    assert W.shape[0] == D and N == D, "residual connection requires size -> size"
    tm = _choose_row_tile(R, D, dtype.itemsize)

    x2 = x.reshape(R, D)
    out = pl.pallas_call(
        _fused_ln_linear_residual_kernel,
        out_shape=jax.ShapeDtypeStruct((R, N), dtype),
        grid=(pl.cdiv(R, tm),),
        in_specs=[
            pl.BlockSpec((tm, D), lambda i: (i, 0)),
            pl.BlockSpec((1, D), lambda i: (0, 0)),   # a_2, resident
            pl.BlockSpec((1, D), lambda i: (0, 0)),   # b_2, resident
            pl.BlockSpec((D, N), lambda i: (0, 0)),   # W,   resident
            pl.BlockSpec((1, N), lambda i: (0, 0)),   # bias, resident
        ],
        out_specs=pl.BlockSpec((tm, N), lambda i: (i, 0)),
        compiler_params=pltpu.CompilerParams(
            dimension_semantics=("parallel",)),
    )(x2, a2.reshape(1, D), b2.reshape(1, D), W, bias.reshape(1, N))
    return out.reshape(B, S, N)


# ----------------------------- reference (plain JAX) -------------------------

def _reference(x, a2, b2, sublayer):
    mean = jnp.mean(x, axis=-1, keepdims=True)
    std = jnp.mean(x, axis=-1, keepdims=True)   # reproduce the reference bug
    normed = a2 * (x - mean) / (std + EPS) + b2
    return x + sublayer(normed)


# ----------------------------- main -------------------------------------------

if __name__ == "__main__":
    B, S, D = 2, 8, 128          # batch, seq, hidden (lane-dense: D % 128 == 0)
    key = jax.random.PRNGKey(0)
    kx, kw, kb = jax.random.split(key, 3)

    # Shift data away from zero mean: the (reproduced) reference bug divides by
    # the row mean, so keep that denominator well-conditioned.
    x = jax.random.normal(kx, (B, S, D), dtype=jnp.float32) + 1.0

    # LayerNorm parameters (as in __init__: ones / zeros)
    a2 = jnp.ones((D,), dtype=jnp.float32)
    b2 = jnp.zeros((D,), dtype=jnp.float32)

    # Example sublayer: deterministic linear map (size -> size)
    W = 0.1 * jax.random.normal(kw, (D, D), dtype=jnp.float32)
    bias = 0.5 * jax.random.normal(kb, (D,), dtype=jnp.float32)
    sublayer = lambda h: jnp.dot(h, W, precision=jax.lax.Precision.HIGHEST) + bias

    ref = _reference(x, a2.reshape(1, 1, D), b2.reshape(1, 1, D), sublayer)

    # --- fused path: LN -> linear -> +bias -> +x in a single pallas_call ---
    out_fused = jax.block_until_ready(
        sublayer_connection_fused_linear(x, a2, b2, W, bias))
    assert out_fused.shape == (B, S, D)
    # Looser tolerance: the in-kernel f32 MXU matmul may use a different
    # precision mode than the HIGHEST-precision XLA reference matmul.
    assert jnp.allclose(out_fused, ref, atol=5e-2, rtol=5e-2), \
        "fused kernel mismatch vs reference"

    # --- generic path: Pallas LN + arbitrary JAX sublayer + XLA-fused residual ---
    out_generic = jax.block_until_ready(
        sublayer_connection(x, a2, b2, sublayer))
    assert out_generic.shape == (B, S, D)
    assert jnp.allclose(out_generic, ref, atol=1e-4, rtol=1e-4), \
        "generic path mismatch vs reference"

    print("KERNEL_OK")
</pallas_src>

<mosaic_0001>
module attributes {stable_mosaic.version = 11 : i64} {
  func.func @_fused_ln_linear_residual_kernel(%arg0: i32, %arg1: memref<16x128xf32, #tpu.memory_space<vmem>>, %arg2: memref<1x128xf32, #tpu.memory_space<vmem>>, %arg3: memref<1x128xf32, #tpu.memory_space<vmem>>, %arg4: memref<128x128xf32, #tpu.memory_space<vmem>>, %arg5: memref<1x128xf32, #tpu.memory_space<vmem>>, %arg6: memref<16x128xf32, #tpu.memory_space<vmem>>) attributes {dimension_semantics = [#tpu.dimension_semantics<parallel>], iteration_bounds = array<i64: 1>, scalar_prefetch = 0 : i64, scratch_operands = 0 : i64, tpu.core_type = #tpu.core_type<tc>, window_params = [{transform_indices = @transform_0, window_bounds = array<i64: 16, 128>}, {pipeline_mode = #tpu.pipeline_mode<synchronous>, transform_indices = @transform_1, window_bounds = array<i64: 1, 128>}, {pipeline_mode = #tpu.pipeline_mode<synchronous>, transform_indices = @transform_2, window_bounds = array<i64: 1, 128>}, {pipeline_mode = #tpu.pipeline_mode<synchronous>, transform_indices = @transform_3, window_bounds = array<i64: 128, 128>}, {pipeline_mode = #tpu.pipeline_mode<synchronous>, transform_indices = @transform_4, window_bounds = array<i64: 1, 128>}, {transform_indices = @transform_5, window_bounds = array<i64: 16, 128>}]} {
    %c0 = arith.constant 0 : index
    %c0_0 = arith.constant 0 : index
    %0 = vector.load %arg1[%c0, %c0_0] : memref<16x128xf32, #tpu.memory_space<vmem>>, vector<16x128xf32>
    %c0_1 = arith.constant 0 : index
    %c0_2 = arith.constant 0 : index
    %1 = vector.load %arg2[%c0_1, %c0_2] : memref<1x128xf32, #tpu.memory_space<vmem>>, vector<1x128xf32>
    %c0_3 = arith.constant 0 : index
    %c0_4 = arith.constant 0 : index
    %2 = vector.load %arg3[%c0_3, %c0_4] : memref<1x128xf32, #tpu.memory_space<vmem>>, vector<1x128xf32>
    %cst = arith.constant dense<0.000000e+00> : vector<16xf32>
    %3 = vector.multi_reduction <add>, %0, %cst [1] : vector<16x128xf32> to vector<16xf32>
    %4 = vector.shape_cast %3 : vector<16xf32> to vector<16x1xf32>
    %cst_5 = arith.constant 1.280000e+02 : f32
    %5 = vector.broadcast %cst_5 : f32 to vector<16x1xf32>
    %6 = arith.divf %4, %5 : vector<16x1xf32>
    %cst_6 = arith.constant 9.99999997E-7 : f32
    %7 = vector.broadcast %cst_6 : f32 to vector<16x1xf32>
    %8 = arith.addf %6, %7 : vector<16x1xf32>
    %9 = tpu.reciprocal %8 : vector<16x1xf32> -> vector<16x1xf32>
    %10 = vector.broadcast %6 : vector<16x1xf32> to vector<16x128xf32>
    %11 = arith.subf %0, %10 : vector<16x128xf32>
    %12 = vector.broadcast %1 : vector<1x128xf32> to vector<16x128xf32>
    %13 = arith.mulf %12, %11 : vector<16x128xf32>
    %14 = vector.broadcast %9 : vector<16x1xf32> to vector<16x128xf32>
    %15 = arith.mulf %13, %14 : vector<16x128xf32>
    %16 = vector.broadcast %2 : vector<1x128xf32> to vector<16x128xf32>
    %17 = arith.addf %15, %16 : vector<16x128xf32>
    %c0_7 = arith.constant 0 : index
    %c0_8 = arith.constant 0 : index
    %18 = vector.load %arg4[%c0_7, %c0_8] : memref<128x128xf32, #tpu.memory_space<vmem>>, vector<128x128xf32>
    %cst_9 = arith.constant dense<0.000000e+00> : vector<16x128xf32>
    %19 = tpu.matmul %17, %18, %cst_9 {dimension_numbers = #tpu.dot_dimension_numbers<[1], [0], [0], [1], [0, 0, 1, 1], [], []>} : vector<16x128xf32>, vector<128x128xf32>, vector<16x128xf32> -> vector<16x128xf32>
    %20 = arith.addf %0, %19 : vector<16x128xf32>
    %c0_10 = arith.constant 0 : index
    %c0_11 = arith.constant 0 : index
    %21 = vector.load %arg5[%c0_10, %c0_11] : memref<1x128xf32, #tpu.memory_space<vmem>>, vector<1x128xf32>
    %22 = vector.broadcast %21 : vector<1x128xf32> to vector<16x128xf32>
    %23 = arith.addf %20, %22 : vector<16x128xf32>
    %c0_12 = arith.constant 0 : index
    %c0_13 = arith.constant 0 : index
    %24 = vector.load %arg6[%c0_12, %c0_13] : memref<16x128xf32, #tpu.memory_space<vmem>>, vector<16x128xf32>
    tpu.vector_store %arg6[%c0_12, %c0_13], %23 {strides = array<i32>} : memref<16x128xf32, #tpu.memory_space<vmem>>, vector<16x128xf32>,
    return
  }
  func.func @transform_0(%arg0: i32) -> (i32, i32) {
    %c0_i32 = arith.constant 0 : i32
    %c0_i32_0 = arith.constant 0 : i32
    return %arg0, %c0_i32 : i32, i32
  }
  func.func @transform_1(%arg0: i32) -> (i32, i32) {
    %c0_i32 = arith.constant 0 : i32
    %c0_i32_0 = arith.constant 0 : i32
    %c0_i32_1 = arith.constant 0 : i32
    return %c0_i32, %c0_i32_0 : i32, i32
  }
  func.func @transform_2(%arg0: i32) -> (i32, i32) {
    %c0_i32 = arith.constant 0 : i32
    %c0_i32_0 = arith.constant 0 : i32
    %c0_i32_1 = arith.constant 0 : i32
    return %c0_i32, %c0_i32_0 : i32, i32
  }
  func.func @transform_3(%arg0: i32) -> (i32, i32) {
    %c0_i32 = arith.constant 0 : i32
    %c0_i32_0 = arith.constant 0 : i32
    %c0_i32_1 = arith.constant 0 : i32
    return %c0_i32, %c0_i32_0 : i32, i32
  }
  func.func @transform_4(%arg0: i32) -> (i32, i32) {
    %c0_i32 = arith.constant 0 : i32
    %c0_i32_0 = arith.constant 0 : i32
    %c0_i32_1 = arith.constant 0 : i32
    return %c0_i32, %c0_i32_0 : i32, i32
  }
  func.func @transform_5(%arg0: i32) -> (i32, i32) {
    %c0_i32 = arith.constant 0 : i32
    %c0_i32_0 = arith.constant 0 : i32
    return %arg0, %c0_i32 : i32, i32
  }
}

</mosaic_0001>

<bundles_post_ra>
// kernel: tpu_custom_call.1
= control target key start
LH: loop header
LB: loop body
LE: loop exit
PB: predicated region body
PF: predicated region fallthrough
CT: control target
= control target key end

     0   :  { %10 = vsyncpa [#allocation3], 0  ;;  %s404_s0 = inlined_call_operand.hbm [shape: f32[16,128], index: 0, kind: input, shape index: {}]   ;;  %s405_s1 = inlined_call_operand.hbm [shape: f32[1,128], index: 1, kind: input, shape index: {}]   ;;  %s406_s2 = inlined_call_operand.vmem [shape: f32[1,128], index: 2, kind: input, shape index: {}]   ;;  %s407_s3 = inlined_call_operand.hbm [shape: f32[128,128], index: 3, kind: input, shape index: {}]   ;;  %s408_s4 = inlined_call_operand.vmem [shape: f32[1,128], index: 4, kind: input, shape index: {}]   ;;  %s409_s5 = inlined_call_operand.hbm [shape: f32[16,128], index: 5, kind: output, shape index: {}]  }
   0x1   :  { %11 = vsyncpa [#allocation6], 0  ;;  %s31_s20 = sshll.u32 %s405_s1, 4  ;;  %s32_s20 = int_to_ptr.hbm [resolvable:$true] %s31_s20 }
   0x2   :  { %12 = vsyncpa [#allocation4], 0  ;;  %s330_s21 = smov [#allocation5]   ;;  %s17_s25 = sshll.u32 %s404_s0, 4  ;;  %s18_s25 = int_to_ptr.hbm [resolvable:$true] %s17_s25 }
   0x3   :  { %s33_s22 = sshll.u32 %s330_s21, 4  ;;  %s331_s26 = smov [#allocation2]   ;;  %s34_s22 = int_to_ptr.vmem [resolvable:$true] %s33_s22 }
   0x4   :  { %36 = dma.hbm_to_vmem [thread:$0]  %s32_s20, 16, %s34_s22, [#allocation6]  }
   0x5   :  { %s19_s27 = sshll.u32 %s331_s26, 4  ;;  %s332_s28 = smov 128   ;;  %s20_s27 = int_to_ptr.vmem [resolvable:$true] %s19_s27 }
   0x6   :  { %s333_s29 = smov 8   ;;  %s43_s6 = sshll.u32 %s407_s3, 4  ;;  %s44_s6 = int_to_ptr.hbm [resolvable:$true] %s43_s6 }
   0x7   :  { %25 = dma.hbm_to_vmem [thread:$0]  %s18_s25, 256, %s20_s27, [#allocation3], %s332_s28, %s332_s28, %s333_s29  }
   0x8   :  { %s334_s7 = smov [#allocation7]  }
   0x9   :  { %s45_s8 = sshll.u32 %s334_s7, 4  ;;  %s46_s8 = int_to_ptr.vmem [resolvable:$true] %s45_s8 }
   0xa   :  { %51 = dma.hbm_to_vmem [thread:$0]  %s44_s6, 2048, %s46_s8, [#allocation6], %s332_s28, %s332_s28, %s333_s29  }
   0xb   :  { %324 = dma.done.wait [#allocation3], 256  }
   0xc   :  { %325 = vsyncadd [#allocation3], 4294967040 }
   0xd   :  { %326 = dma.done.wait [#allocation6], 2064  }
   0xe   :  { %327 = vsyncadd [#allocation6], 4294965232  ;;  %v382_v0 = vld [vmem:[#allocation2] sm:$0xff]  ;;  %v142_v1 = vld [vmem:[#allocation7 + $0x78] sm:$0xff]  ;;  %v335_v8 = vmov 128.0   ;;  %s336_s10 = smov [#allocation8]  }
   0xf   :  { %70 = vadd.xlane.f32.xlu0 %v382_v0  ;;  %143 = vmatpush.msra.mxu0 %v142_v1  ;;  %v141_v2 = vld [vmem:[#allocation7 + $0x70] sm:$0xff]  ;;  %v140_v3 = vld [vmem:[#allocation7 + $0x68] sm:$0xff]  ;;  %v139_v5 = vld [vmem:[#allocation7 + $0x60] sm:$0xff]  ;;  %222 = vrcp.f32 %v335_v8  ;;  %s180_s11 = sshll.u32 %s336_s10, 4  ;;  %s182_s14 = sshll.u32 %s409_s5, 4  ;;  %s181_s11 = int_to_ptr.vmem [resolvable:$true] %s180_s11  ;;  %s183_s14 = int_to_ptr.hbm [resolvable:$true] %s182_s14 }
  0x10   :  { %196 = vmatpush.msra.mxu1 %v142_v1  ;;  %v385_v4 = vld [vmem:[#allocation2 + $0x8] sm:$0xff]  ;;  %v136_v9 = vld [vmem:[#allocation7 + $0x48] sm:$0xff]  ;;  %v135_v10 = vld [vmem:[#allocation7 + $0x40] sm:$0xff] }
  0x11   :  { %144 = vmatpush.msra.mxu0 %v141_v2  ;;  %v138_v6 = vld [vmem:[#allocation7 + $0x58] sm:$0xff]  ;;  %v137_v7 = vld [vmem:[#allocation7 + $0x50] sm:$0xff]  ;;  %v132_v15 = vld [vmem:[#allocation7 + $0x28] sm:$0xff] }
  0x12   :  { %197 = vmatpush.msra.mxu1 %v141_v2  ;;  %v134_v11 = vld [vmem:[#allocation7 + $0x38] sm:$0xff]  ;;  %v133_v13 = vld [vmem:[#allocation7 + $0x30] sm:$0xff]  ;;  %v131_v16 = vld [vmem:[#allocation7 + $0x20] sm:$0xff] }
  0x13   :  { %145 = vmatpush.msra.mxu0 %v140_v3  ;;  %v130_v18 = vld [vmem:[#allocation7 + $0x18] sm:$0xff]  ;;  %v129_v19 = vld [vmem:[#allocation7 + $0x10] sm:$0xff]  ;;  %v128_v20 = vld [vmem:[#allocation7 + $0x8] sm:$0xff] }
  0x14   :  { %198 = vmatpush.msra.mxu1 %v140_v3  ;;  %v127_v22 = vld [vmem:[#allocation7] sm:$0xff]  ;;  %v219_v35 = vld [vmem:[#allocation5] ss:$0 sm:$0xff]  ;;  %v220_v45 = vld [vmem:[%s406_s2] ss:$0 sm:$0xff] }
  0x15   :  { %146 = vmatpush.msra.mxu0 %v139_v5  ;;  %v223_v12 = vpop.eup %222  ;;  %v221_v61 = vld [vmem:[%s408_s4] ss:$0 sm:$0xff] }
  0x16   :  { %199 = vmatpush.msra.mxu1 %v139_v5  ;;  %v75_v14 = vmul.f32 128.0, %v223_v12  ;;  %vm79_vm0 = vweird.f32 %v223_v12 }
  0x17   :  { %72 = vadd.xlane.f32.xlu0 %v385_v4  ;;  %147 = vmatpush.msra.mxu0 %v138_v6 }
  0x18   :  { %200 = vmatpush.msra.mxu1 %v138_v6  ;;  %v76_v17 = vsub.f32 1.0, %v75_v14 }
  0x19   :  { %148 = vmatpush.msra.mxu0 %v137_v7 }
  0x1a   :  { %201 = vmatpush.msra.mxu1 %v137_v7  ;;  %v77_v21 = vmul.f32 %v223_v12, %v76_v17 }
  0x1b   :  { %149 = vmatpush.msra.mxu0 %v136_v9 }
  0x1c   :  { %202 = vmatpush.msra.mxu1 %v136_v9  ;;  %v78_v23 = vadd.f32 %v223_v12, %v77_v21 }
  0x1d   :  { %150 = vmatpush.msra.mxu0 %v135_v10 }
  0x1e   :  { %203 = vmatpush.msra.mxu1 %v135_v10  ;;  %v80_v24 = vsel %vm79_vm0, %v223_v12, %v78_v23 }
  0x1f   :  { %151 = vmatpush.msra.mxu0 %v134_v11 }
  0x20   :  { %204 = vmatpush.msra.mxu1 %v134_v11 }
  0x21   :  { %152 = vmatpush.msra.mxu0 %v133_v13 }
  0x22   :  { %205 = vmatpush.msra.mxu1 %v133_v13 }
  0x23   :  { %153 = vmatpush.msra.mxu0 %v132_v15 }
  0x24   :  { %206 = vmatpush.msra.mxu1 %v132_v15 }
  0x25   :  { %154 = vmatpush.msra.mxu0 %v131_v16 }
  0x26   :  { %207 = vmatpush.msra.mxu1 %v131_v16 }
  0x27   :  { %155 = vmatpush.msra.mxu0 %v130_v18 }
  0x28   :  { %208 = vmatpush.msra.mxu1 %v130_v18 }
  0x29   :  { %156 = vmatpush.msra.mxu0 %v129_v19 }
  0x2a   :  { %209 = vmatpush.msra.mxu1 %v129_v19 }
  0x2b   :  { %157 = vmatpush.msra.mxu0 %v128_v20 }
  0x2c   :  { %210 = vmatpush.msra.mxu1 %v128_v20 }
  0x2d   :  { %158 = vmatpush.msra.mxu0 %v127_v22 }
  0x2e   :  { %211 = vmatpush.msra.mxu1 %v127_v22 }
  0x82   :  { %v71_v25 = vpop.xlane.xlu0 %70 }
  0x83   :  { %v81_v26 = vmul.f32 %v80_v24, %v71_v25 }
  0x85   :  { %v83_v27 = vadd.f32 1e-06, %v81_v26  ;;  %v113_v36 = vsub.f32 %v382_v0, %v81_v26 }
  0x87   :  { %224 = vrcp.f32 %v83_v27  ;;  %v96_v34 = vand.u32 2147483648, %v83_v27  ;;  %v94_v38 = vand.u32 2147483647, %v83_v27  ;;  %vm90_vm2 = vweird.f32 %v83_v27 }
  0x88   :  { %v118_v42 = vmul.f32 %v219_v35, %v113_v36 }
  0x89   :  { %v97_v41 = vor.u32 1.1754944e-38, %v96_v34  ;;  %vm95_vm4 = vcmp.eq.f32.partialorder %v94_v38, 8.507059e+37 }
  0x8a   :  { %v73_v28 = vpop.xlane.xlu0 %72 }
  0x8b   :  { %v82_v29 = vmul.f32 %v80_v24, %v73_v28 }
  0x8d   :  { %v225_v30 = vpop.eup %224  ;;  %v84_v31 = vadd.f32 1e-06, %v82_v29  ;;  %v114_v49 = vsub.f32 %v385_v4, %v82_v29 }
  0x8e   :  { %v86_v32 = vmul.f32 %v225_v30, %v83_v27  ;;  %vm91_vm1 = vweird.f32 %v225_v30 }
  0x8f   :  { %226 = vrcp.f32 %v84_v31  ;;  %vm92_vm3 = vmor %vm90_vm2, %vm91_vm1  ;;  %v110_v50 = vand.u32 2147483648, %v84_v31  ;;  %v108_v53 = vand.u32 2147483647, %v84_v31  ;;  %vm104_vm6 = vweird.f32 %v84_v31 }
  0x90   :  { %v87_v33 = vsub.f32 1.0, %v86_v32  ;;  %v119_v56 = vmul.f32 %v219_v35, %v114_v49 }
  0x91   :  { %v111_v55 = vor.u32 1.1754944e-38, %v110_v50  ;;  %vm109_vm8 = vcmp.eq.f32.partialorder %v108_v53, 8.507059e+37 }
  0x92   :  { %v88_v37 = vmul.f32 %v225_v30, %v87_v33 }
  0x94   :  { %v89_v39 = vadd.f32 %v225_v30, %v88_v37 }
  0x95   :  { %v227_v40 = vpop.eup %226 }
  0x96   :  { %v100_v43 = vmul.f32 %v227_v40, %v84_v31  ;;  %v93_v44 = vsel %vm92_vm3, %v225_v30, %v89_v39  ;;  %vm105_vm5 = vweird.f32 %v227_v40 }
  0x97   :  { %v98_v46 = vsel %vm95_vm4, %v97_v41, %v93_v44  ;;  %vm106_vm7 = vmor %vm104_vm6, %vm105_vm5 }
  0x98   :  { %v120_v47 = vmul.f32 %v118_v42, %v98_v46  ;;  %v101_v48 = vsub.f32 1.0, %v100_v43 }
  0x9a   :  { %v125_v51 = vadd.f32 %v220_v45, %v120_v47  ;;  %v102_v52 = vmul.f32 %v227_v40, %v101_v48 }
  0x9c   :  { %159 = vmatmul.f32.vlgmr.msra.gmra.mxu0 %v125_v51  ;;  %v103_v54 = vadd.f32 %v227_v40, %v102_v52 }
  0x9e   :  { %v107_v57 = vsel %vm106_vm7, %v227_v40, %v103_v54 }
  0x9f   :  { %v112_v58 = vsel %vm109_vm8, %v111_v55, %v107_v57 }
  0xa0   :  { %v121_v59 = vmul.f32 %v119_v56, %v112_v58 }
  0xa2   :  { %v126_v60 = vadd.f32 %v220_v45, %v121_v59 }
  0xa4   :  { %162 = vmatmul.f32.vlgmr.msra.gmra.mxu1 %v126_v60 }
 0x119   :  { %v160_v62 = vpop.f32.mrf.mxu0 }
 0x11a   :  { %v166_v63 = vadd.f32 %v160_v62, %v382_v0 }
 0x11c   :  { %v172_v1 = vadd.f32 %v221_v61, %v166_v63 }
 0x11e   :  { %174 = vst [vmem:[#allocation8] sm:$0xff] %v172_v1 }
 0x121   :  { %v163_v2 = vpop.f32.mrf.mxu1 }
 0x122   :  { %v167_v3 = vadd.f32 %v163_v2, %v385_v4 }
 0x124   :  { %v173_v5 = vadd.f32 %v221_v61, %v167_v3 }
 0x126   :  { %175 = vst [vmem:[#allocation8 + $0x8] sm:$0xff] %v173_v5 }
 0x127   :  { %188 = dma.vmem_to_hbm [thread:$0]  %s181_s11, 256, %s183_s14, [#allocation4], %s332_s28, %s332_s28, %s333_s29  }
 0x128   :  { %328 = dma.done.wait [#allocation4], 256  }
 0x129   :  { %329 = vsyncadd [#allocation4], 4294967040 }
 0x12a   :  { %193 = vsyncpa [#allocation3], 1 }
 0x12b   :  { %194 = vsyncpa [#allocation6], 1 }
 0x12c   :  { %195 = vsyncpa [#allocation4], 1 }

</bundles_post_ra>
